<compile_context>
chip_gen: v7x
topology: tpu7x:2x2x1
jax: 0.10.0
libtpu: 0.0.40
codegen_flags: <defaults>
</compile_context>

<pallas_src>
import functools
import math
from types import SimpleNamespace

import jax
import jax.numpy as jnp
import numpy as np
from jax.experimental import pallas as pl
from jax.experimental.pallas import tpu as pltpu


_LANES = 128
_MAX_PACK_WIDTH = 512                   # cap on lcm(latent_dim, 128) packing width
_VMEM_INPUT_BUDGET = 16 * 1024 * 1024   # working-set budget used for tile sizing
_VMEM_LIMIT = 32 * 1024 * 1024          # explicit scoped-VMEM limit (<= physical on all gens)


def _bytes_per_row(width, itemsize, out_width):
    """Per-row VMEM cost of one grid step: 2 inputs x 2 pipeline buffers in the
    native dtype, the f32 diff/per temporaries the kernel materializes
    (~8 B/elem), and the double-buffered f32 output row."""
    return width * (4 * itemsize + 8) + out_width * 8


def _pick_row_tile(n_rows, bytes_per_row, align=8):
    """Largest row tile whose working set fits the VMEM budget, aiming for
    >= 4 grid steps (>= 2 per TensorCore on v7x megacore) when possible."""
    max_rows = max(1, _VMEM_INPUT_BUDGET // bytes_per_row)
    target = min(max_rows, -(-n_rows // 4))            # ceil(n_rows / 4)
    if target >= n_rows:
        return n_rows                                   # single full block (always legal)
    tn = (target // align) * align
    if tn == 0:
        tn = min(align, n_rows)
    return tn


def _pick_pack_width(d, total):
    """Lane-dense packing width: a multiple of both latent_dim and 128 that
    divides the flat element count.  Prefers 256 (one pass through the
    256-deep v6e/v7x MXU; neutral on v5e's 128-deep MXU), otherwise
    lcm(d, 128) up to _MAX_PACK_WIDTH."""
    l0 = (d * _LANES) // math.gcd(d, _LANES)            # lcm(d, 128)
    if l0 > _MAX_PACK_WIDTH:
        return None
    candidates = []
    if l0 < 256 and 256 % l0 == 0:
        candidates.append(256)
    candidates.append(l0)
    for width in candidates:
        if total % width == 0:
            return width
    return None


def _packed_kernel(wT_ref, truth_ref, pred_ref, out_ref, *, loss_type):
    # truth/pred tile: [tn, L] with g = L // latent_dim vectors packed per row.
    diff = truth_ref[...].astype(jnp.float32) - pred_ref[...].astype(jnp.float32)
    per = jnp.abs(diff) if loss_type == "l1" else diff * diff
    # Segmented per-latent-vector mean via a block-diagonal (1/d) matmul on the
    # MXU, written in the natural (lhs-last x rhs-first) contraction so Mosaic
    # emits a plain matmul with a lane-dense [tn, g] result (no vxpose/relayout
    # of the big f32 tile, no wrapper-side transpose).
    out_ref[...] = jax.lax.dot_general(
        per, wT_ref[...],
        dimension_numbers=(((1,), (0,)), ((), ())),
        preferred_element_type=jnp.float32)


def _rowwise_kernel(truth_ref, pred_ref, out_ref, *, loss_type, inv_d):
    # Last-resort fallback: tile [tn, D] with D == full latent_dim.
    diff = truth_ref[...].astype(jnp.float32) - pred_ref[...].astype(jnp.float32)
    per = jnp.abs(diff) if loss_type == "l1" else diff * diff
    out_ref[...] = jnp.sum(per, axis=-1, keepdims=True) * jnp.float32(inv_d)


def _recon_loss_pallas(truth, pred, loss_type):
    """truth/pred: [*, latent_dim] (any dtype).  Returns recon loss [*] (f32)."""
    if loss_type not in ("l1", "l2"):
        raise NotImplementedError(loss_type)
    assert truth.shape == pred.shape, (truth.shape, pred.shape)

    lead_shape = truth.shape[:-1]
    d = truth.shape[-1]
    n_rows = int(np.prod(lead_shape)) if lead_shape else 1
    total = n_rows * d
    itemsize = max(jnp.dtype(truth.dtype).itemsize, jnp.dtype(pred.dtype).itemsize)

    compiler_params = pltpu.CompilerParams(
        dimension_semantics=("parallel",),
        vmem_limit_bytes=_VMEM_LIMIT)

    # Advisory cost hint: lets XLA overlap this bandwidth-bound kernel with
    # neighboring compute instead of serializing it inside a larger step.
    cost = pl.CostEstimate(
        flops=int(3 * total),
        transcendentals=0,
        bytes_accessed=int(2 * total * itemsize + n_rows * 4))

    width = _pick_pack_width(d, total)

    if width is not None:
        g = width // d
        n_packed = total // width
        # NOTE: assumes truth/pred are contiguous row-major; a strided/transposed
        # view would make these reshapes an extra HBM copy (perf only).
        t2d = truth.reshape(n_packed, width)            # layout-only
        p2d = pred.reshape(n_packed, width)

        tn = _pick_row_tile(n_packed, _bytes_per_row(width, itemsize, g), align=8)
        grid = (pl.cdiv(n_packed, tn),)                 # ragged tail: OOB rows discarded

        # Block-diagonal reduction matrix, pre-transposed to the natural MXU RHS:
        # wT[lane, grp] = 1/d  iff  lane // d == grp.
        lane = np.arange(width)
        wT_np = np.zeros((width, g), np.float32)
        wT_np[lane, lane // d] = 1.0 / d
        wT = jnp.asarray(wT_np)

        # TODO(synk): sweep pipeline_mode=pl.Buffered(3) on the input specs if
        # VMEM pressure ever forces tn below ~1K rows on v7x.
        out = pl.pallas_call(
            functools.partial(_packed_kernel, loss_type=loss_type),
            out_shape=jax.ShapeDtypeStruct((n_packed, g), jnp.float32),
            grid=grid,
            in_specs=[
                pl.BlockSpec((width, g), lambda i: (0, 0)),     # wT stays resident
                pl.BlockSpec((tn, width), lambda i: (i, 0)),
                pl.BlockSpec((tn, width), lambda i: (i, 0)),
            ],
            out_specs=pl.BlockSpec((tn, g), lambda i: (i, 0)),
            compiler_params=compiler_params,
            cost_estimate=cost,
        )(wT, t2d, p2d)
        # out[row, grp] == recon[row * g + grp]  -> plain reshape, no transpose.
        recon = out.reshape(lead_shape)
    else:
        # Last resort (lcm(d,128) too large or element count not divisible):
        # lane utilization d/next128(d), XLU cross-lane reduce, masked (tn,1) store.
        t2d = truth.reshape(n_rows, d)
        p2d = pred.reshape(n_rows, d)
        tn = _pick_row_tile(n_rows, _bytes_per_row(d, itemsize, 1), align=8)
        grid = (pl.cdiv(n_rows, tn),)
        out = pl.pallas_call(
            functools.partial(_rowwise_kernel, loss_type=loss_type, inv_d=1.0 / d),
            out_shape=jax.ShapeDtypeStruct((n_rows, 1), jnp.float32),
            grid=grid,
            in_specs=[
                pl.BlockSpec((tn, d), lambda i: (i, 0)),
                pl.BlockSpec((tn, d), lambda i: (i, 0)),
            ],
            out_specs=pl.BlockSpec((tn, 1), lambda i: (i, 0)),
            compiler_params=compiler_params,
            cost_estimate=cost,
        )(t2d, p2d)
        recon = out[:, 0].reshape(lead_shape)

    return recon


class LatentLoss:
    """JAX/Pallas port of TopoDiff LatentLoss (forward only)."""

    def __init__(self, config, depth=0, log=False, log_parm=False):
        self.depth = depth
        self.log = log
        self.config = config

    def forward(self, feat, result, _return_breakdown=False):
        pred_type = self.config.recon.pred_type
        if pred_type == "eps":
            truth = result["latent_eps"]
        elif pred_type == "x_0":
            truth = result["latent_gt"]
        else:
            raise NotImplementedError(pred_type)

        recon = _recon_loss_pallas(truth, result["pred"],
                                   loss_type=self.config.recon.type)
        cum_loss = recon * jnp.float32(self.config.recon.weight)

        if not _return_breakdown:
            return cum_loss
        # NOTE: the PyTorch reference copies losses to host numpy here; we keep
        # device arrays so the loss can overlap with other device work.
        losses = {"recon": recon, "total_loss": cum_loss}
        return cum_loss, losses

    __call__ = forward


def _reference(result, config):
    truth = (result["latent_eps"] if config.recon.pred_type == "eps"
             else result["latent_gt"])
    diff = truth.astype(jnp.float32) - result["pred"].astype(jnp.float32)
    if config.recon.type == "l1":
        loss = jnp.mean(jnp.abs(diff), axis=-1)
    else:
        loss = jnp.mean(diff * diff, axis=-1)
    return loss * config.recon.weight


def _make_result(key, lead_shape, latent_dim, dtype=jnp.float32):
    k1, k2, k3, k4 = jax.random.split(key, 4)
    shape = tuple(lead_shape) + (latent_dim,)
    return {
        "latent_noised": jax.random.normal(k1, shape, jnp.float32).astype(dtype),
        "latent_eps": jax.random.normal(k2, shape, jnp.float32).astype(dtype),
        "pred": jax.random.normal(k3, shape, jnp.float32).astype(dtype),
        "latent_gt": jax.random.normal(k4, shape, jnp.float32).astype(dtype),
    }


if __name__ == "__main__":
    key = jax.random.PRNGKey(0)
    k_a, k_b, k_c, k_d, k_e = jax.random.split(key, 5)

    # --- Case 1: small demo shapes, 'eps' / l2, K=256 packing, breakdown ----
    batch, latent_dim = 8, 32
    result = _make_result(k_a, (batch,), latent_dim)
    feat = {"latent_gt": result["latent_gt"],
            "time_step": jnp.arange(batch, dtype=jnp.int32)}
    config = SimpleNamespace(
        recon=SimpleNamespace(pred_type="eps", type="l2", weight=0.5))
    cum_loss, breakdown = LatentLoss(config)(feat, result, _return_breakdown=True)
    cum_loss = jax.block_until_ready(cum_loss)
    ref = jax.block_until_ready(_reference(result, config))
    np.testing.assert_allclose(np.asarray(cum_loss), np.asarray(ref),
                               rtol=1e-5, atol=1e-5)
    np.testing.assert_allclose(np.asarray(breakdown["recon"]) * 0.5,
                               np.asarray(ref), rtol=1e-5, atol=1e-5)

    # --- Case 2: 'x_0' / l1 branch ------------------------------------------
    config_l1 = SimpleNamespace(
        recon=SimpleNamespace(pred_type="x_0", type="l1", weight=2.0))
    cum_l1 = jax.block_until_ready(LatentLoss(config_l1)(feat, result))
    ref_l1 = jax.block_until_ready(_reference(result, config_l1))
    np.testing.assert_allclose(np.asarray(cum_l1), np.asarray(ref_l1),
                               rtol=1e-5, atol=1e-5)

    # --- Case 3: K=128 packed path, multi-step grid + ragged tail -----------
    result3 = _make_result(k_b, (4, 333), 32)
    feat3 = {"latent_gt": result3["latent_gt"],
             "time_step": jnp.zeros((4, 333), jnp.int32)}
    cfg3 = SimpleNamespace(recon=SimpleNamespace(pred_type="eps", type="l2", weight=1.0))
    out3 = jax.block_until_ready(LatentLoss(cfg3)(feat3, result3))
    ref3 = jax.block_until_ready(_reference(result3, cfg3))
    np.testing.assert_allclose(np.asarray(out3), np.asarray(ref3),
                               rtol=1e-5, atol=1e-5)

    # --- Case 4: rowwise fallback (element count not divisible by lcm) ------
    result4 = _make_result(k_c, (10,), 48)
    feat4 = {"latent_gt": result4["latent_gt"],
             "time_step": jnp.arange(10, dtype=jnp.int32)}
    cfg4 = SimpleNamespace(recon=SimpleNamespace(pred_type="eps", type="l1", weight=0.7))
    out4 = jax.block_until_ready(LatentLoss(cfg4)(feat4, result4))
    ref4 = jax.block_until_ready(_reference(result4, cfg4))
    np.testing.assert_allclose(np.asarray(out4), np.asarray(ref4),
                               rtol=1e-5, atol=1e-5)

    # --- Case 5: bf16 inputs stay bf16 in HBM, upcast inside the kernel -----
    result5 = _make_result(k_d, (8,), 32, dtype=jnp.bfloat16)
    feat5 = {"latent_gt": result5["latent_gt"],
             "time_step": jnp.arange(8, dtype=jnp.int32)}
    out5 = jax.block_until_ready(LatentLoss(config)(feat5, result5))
    ref5 = jax.block_until_ready(_reference(result5, config))
    np.testing.assert_allclose(np.asarray(out5), np.asarray(ref5),
                               rtol=1e-5, atol=1e-5)

    # --- Case 6: lcm packing (d=48 -> L=384), multi-step grid + ragged tail -
    result6 = _make_result(k_e, (10, 48), 48)
    feat6 = {"latent_gt": result6["latent_gt"],
             "time_step": jnp.zeros((10, 48), jnp.int32)}
    cfg6 = SimpleNamespace(recon=SimpleNamespace(pred_type="eps", type="l2", weight=1.3))
    out6 = jax.block_until_ready(LatentLoss(cfg6)(feat6, result6))
    ref6 = jax.block_until_ready(_reference(result6, cfg6))
    np.testing.assert_allclose(np.asarray(out6), np.asarray(ref6),
                               rtol=1e-5, atol=1e-5)

    print("KERNEL_OK")
</pallas_src>

<mosaic_0001>
module attributes {stable_mosaic.version = 11 : i64} {
  func.func @_packed_kernel(%arg0: i32, %arg1: memref<256x8xf32, #tpu.memory_space<vmem>>, %arg2: memref<1x256xf32, #tpu.memory_space<vmem>>, %arg3: memref<1x256xf32, #tpu.memory_space<vmem>>, %arg4: memref<1x8xf32, #tpu.memory_space<vmem>>) attributes {dimension_semantics = [#tpu.dimension_semantics<parallel>], iteration_bounds = array<i64: 1>, scalar_prefetch = 0 : i64, scratch_operands = 0 : i64, tpu.core_type = #tpu.core_type<tc>, window_params = [{pipeline_mode = #tpu.pipeline_mode<synchronous>, transform_indices = @transform_0, window_bounds = array<i64: 256, 8>}, {transform_indices = @transform_1, window_bounds = array<i64: 1, 256>}, {transform_indices = @transform_2, window_bounds = array<i64: 1, 256>}, {transform_indices = @transform_3, window_bounds = array<i64: 1, 8>}]} {
    %c0 = arith.constant 0 : index
    %c0_0 = arith.constant 0 : index
    %0 = vector.load %arg2[%c0, %c0_0] : memref<1x256xf32, #tpu.memory_space<vmem>>, vector<1x256xf32>
    %c0_1 = arith.constant 0 : index
    %c0_2 = arith.constant 0 : index
    %1 = vector.load %arg3[%c0_1, %c0_2] : memref<1x256xf32, #tpu.memory_space<vmem>>, vector<1x256xf32>
    %2 = arith.subf %0, %1 : vector<1x256xf32>
    %3 = arith.mulf %2, %2 : vector<1x256xf32>
    %c0_3 = arith.constant 0 : index
    %c0_4 = arith.constant 0 : index
    %4 = vector.load %arg1[%c0_3, %c0_4] : memref<256x8xf32, #tpu.memory_space<vmem>>, vector<256x8xf32>
    %cst = arith.constant dense<0.000000e+00> : vector<1x8xf32>
    %5 = tpu.matmul %3, %4, %cst {dimension_numbers = #tpu.dot_dimension_numbers<[1], [0], [0], [1], [0, 0, 1, 1], [], []>} : vector<1x256xf32>, vector<256x8xf32>, vector<1x8xf32> -> vector<1x8xf32>
    %c0_5 = arith.constant 0 : index
    %c0_6 = arith.constant 0 : index
    %6 = vector.load %arg4[%c0_5, %c0_6] : memref<1x8xf32, #tpu.memory_space<vmem>>, vector<1x8xf32>
    tpu.vector_store %arg4[%c0_5, %c0_6], %5 {strides = array<i32>} : memref<1x8xf32, #tpu.memory_space<vmem>>, vector<1x8xf32>,
    return
  }
  func.func @transform_0(%arg0: i32) -> (i32, i32) {
    %c0_i32 = arith.constant 0 : i32
    %c0_i32_0 = arith.constant 0 : i32
    %c0_i32_1 = arith.constant 0 : i32
    return %c0_i32, %c0_i32_0 : i32, i32
  }
  func.func @transform_1(%arg0: i32) -> (i32, i32) {
    %c0_i32 = arith.constant 0 : i32
    %c0_i32_0 = arith.constant 0 : i32
    return %arg0, %c0_i32 : i32, i32
  }
  func.func @transform_2(%arg0: i32) -> (i32, i32) {
    %c0_i32 = arith.constant 0 : i32
    %c0_i32_0 = arith.constant 0 : i32
    return %arg0, %c0_i32 : i32, i32
  }
  func.func @transform_3(%arg0: i32) -> (i32, i32) {
    %c0_i32 = arith.constant 0 : i32
    %c0_i32_0 = arith.constant 0 : i32
    return %arg0, %c0_i32 : i32, i32
  }
}

</mosaic_0001>

<bundles_post_ra>
// kernel: tpu_custom_call.1
= control target key start
LH: loop header
LB: loop body
LE: loop exit
PB: predicated region body
PF: predicated region fallthrough
CT: control target
= control target key end

     0   :  { %v52_v14 = vlaneseq  ;;  %s375_s0 = inlined_call_operand.vmem [shape: f32[256,8], index: 0, kind: input, shape index: {}]   ;;  %s376_s1 = inlined_call_operand.vmem [shape: f32[1,256], index: 1, kind: input, shape index: {}]   ;;  %s377_s2 = inlined_call_operand.vmem [shape: f32[1,256], index: 2, kind: input, shape index: {}]   ;;  %s378_s3 = inlined_call_operand.hbm [shape: f32[1,8], index: 3, kind: output, shape index: {}]  }
   0x1   :  { %v35_v0 = vld [vmem:[%s375_s0 + $0x80] sm:$0xff]  ;;  %v36_v1 = vld [vmem:[%s375_s0 + $0x88] sm:$0xff]  ;;  %v37_v5 = vld [vmem:[%s375_s0 + $0x90] sm:$0xff] }
   0x2   :  { %v19_v2 = vld [vmem:[%s375_s0] sm:$0xff]  ;;  %v183_v3 = vpack.c.bf16 %v36_v1, %v35_v0  ;;  %v20_v4 = vld [vmem:[%s375_s0 + $0x8] sm:$0xff]  ;;  %v38_v6 = vld [vmem:[%s375_s0 + $0x98] sm:$0xff]  ;;  %v53_v21 = vshrl.u32 %v52_v14, 7 }
   0x3   :  { %v185_v7 = vpack.c.bf16 %v20_v4, %v19_v2  ;;  %v187_v8 = vpack.c.bf16 %v38_v6, %v37_v5  ;;  %v21_v9 = vld [vmem:[%s375_s0 + $0x10] sm:$0xff]  ;;  %v22_v10 = vld [vmem:[%s375_s0 + $0x18] sm:$0xff]  ;;  %v39_v11 = vld [vmem:[%s375_s0 + $0xa0] sm:$0xff] }
   0x4   :  { %184 = vmatprep.subr.bf16.mxu0 %v183_v3  ;;  %v40_v12 = vld [vmem:[%s375_s0 + $0xa8] sm:$0xff]  ;;  %v189_v13 = vpack.c.bf16 %v22_v10, %v21_v9  ;;  %v23_v16 = vld [vmem:[%s375_s0 + $0x20] sm:$0xff]  ;;  %v41_v18 = vld [vmem:[%s375_s0 + $0xb0] sm:$0xff] }
   0x5   :  { %186 = vmatpush3.bf16.msra.mxu0 %v185_v7  ;;  %v191_v15 = vpack.c.bf16 %v40_v12, %v39_v11  ;;  %v24_v17 = vld [vmem:[%s375_s0 + $0x28] sm:$0xff]  ;;  %v42_v19 = vld [vmem:[%s375_s0 + $0xb8] sm:$0xff]  ;;  %v25_v23 = vld [vmem:[%s375_s0 + $0x30] sm:$0xff] }
   0x6   :  { %188 = vmatprep.subr.bf16.mxu0 %v187_v8  ;;  %v193_v20 = vpack.c.bf16 %v24_v17, %v23_v16  ;;  %v195_v22 = vpack.c.bf16 %v42_v19, %v41_v18  ;;  %v26_v24 = vld [vmem:[%s375_s0 + $0x38] sm:$0xff]  ;;  %v43_v25 = vld [vmem:[%s375_s0 + $0xc0] sm:$0xff]  ;;  %v44_v26 = vld [vmem:[%s375_s0 + $0xc8] sm:$0xff] }
   0x7   :  { %v15_v27 = vld [vmem:[%s376_s1] sm:$0x3] }
   0x8   :  { %v16_v28 = vld [vmem:[%s377_s2] sm:$0x3] }
   0x9   :  { %190 = vmatpush3.bf16.msra.mxu0 %v189_v13 }
   0xa   :  { %192 = vmatprep.subr.bf16.mxu0 %v191_v15 }
   0xb   :  { %8 = vsyncpa [#allocation3], 0  ;;  %v197_v29 = vpack.c.bf16 %v26_v24, %v25_v23  ;;  %v17_v30 = vsub.f32 %v15_v27, %v16_v28  ;;  %v58_v31 = vsub.s32 1, %v53_v21  ;;  %v199_v32 = vpack.c.bf16 %v44_v26, %v43_v25  ;;  %v27_v33 = vld [vmem:[%s375_s0 + $0x40] sm:$0xff]  ;;  %v28_v34 = vld [vmem:[%s375_s0 + $0x48] sm:$0xff]  ;;  %s240_s24 = smov [#allocation2]  }
   0xc   :  { %v45_v35 = vld [vmem:[%s375_s0 + $0xd0] sm:$0xff]  ;;  %v46_v36 = vld [vmem:[%s375_s0 + $0xd8] sm:$0xff]  ;;  %v201_v38 = vpack.c.bf16 %v28_v34, %v27_v33  ;;  %v47_v43 = vld [vmem:[%s375_s0 + $0xe0] sm:$0xff]  ;;  %v54_v55 = vsub.s32 0, %v53_v21  ;;  %s140_s25 = sshll.u32 %s240_s24, 4  ;;  %vm132_vm0 = vcmask 57344   ;;  %s141_s25 = int_to_ptr.vmem [resolvable:$true] %s140_s25 }
   0xd   :  { %194 = vmatpush3.bf16.msra.mxu0 %v193_v20  ;;  %v18_v37 = vmul.f32 %v17_v30, %v17_v30  ;;  %v203_v40 = vpack.c.bf16 %v46_v36, %v45_v35  ;;  %v29_v41 = vld [vmem:[%s375_s0 + $0x50] sm:$0xff]  ;;  %v30_v42 = vld [vmem:[%s375_s0 + $0x58] sm:$0xff]  ;;  %v48_v44 = vld [vmem:[%s375_s0 + $0xe8] sm:$0xff]  ;;  %s216_s26 = scalar_lea.vmem %s141_s25, 16  ;;  %s220_s27 = scalar_lea.vmem %s141_s25, 32 }
   0xe   :  { %196 = vmatprep.subr.bf16.mxu0 %v195_v22  ;;  %v205_v45 = vpack.c.bf16 %v30_v42, %v29_v41  ;;  %v207_v46 = vpack.c.bf16 %v48_v44, %v47_v43  ;;  %v31_v47 = vld [vmem:[%s375_s0 + $0x60] sm:$0xff]  ;;  %v32_v48 = vld [vmem:[%s375_s0 + $0x68] sm:$0xff]  ;;  %v49_v49 = vld [vmem:[%s375_s0 + $0xf0] sm:$0xff]  ;;  %p217_p0 = scmp.ne.s32.totalorder %s141_s25, %s216_s26  ;;  %p221_p1 = scmp.lt.s32.totalorder %s141_s25, %s141_s25 }
   0xf   :  { %v59_v39 = vrot.slane %v18_v37, %v58_v31  ;;  %v50_v50 = vld [vmem:[%s375_s0 + $0xf8] sm:$0xff]  ;;  %v209_v51 = vpack.c.bf16 %v32_v48, %v31_v47  ;;  %v33_v53 = vld [vmem:[%s375_s0 + $0x70] sm:$0xff]  ;;  %v55_v57 = vrot.slane %v18_v37, %v54_v55  ;;  %p222_p2 = scmp.lt.s32.totalorder %s220_s27, %s216_s26 }
  0x10   :  { %v211_v52 = vpack.c.bf16 %v50_v50, %v49_v49  ;;  %v34_v54 = vld [vmem:[%s375_s0 + $0x78] sm:$0xff] }
  0x11   :  { %198 = vmatpush3.bf16.msra.mxu0 %v197_v29  ;;  %126 = vmatprep.mubr.f32.mxu0 %v59_v39  ;;  %v213_v56 = vpack.c.bf16 %v34_v54, %v33_v53  ;;  %p223_p3 = por %p222_p2, %p221_p1 }
  0x12   :  { %200 = vmatprep.subr.bf16.mxu0 %v199_v32 }
  0x13   :  { %p224_p4 = pnand %p223_p3, %p217_p0 }
  0x15   :  { %202 = vmatpush3.bf16.msra.mxu0 %v201_v38 }
  0x16   :  { %204 = vmatprep.subr.bf16.mxu0 %v203_v40 }
  0x19   :  { %206 = vmatpush3.bf16.msra.mxu0 %v205_v45 }
  0x1a   :  { %208 = vmatprep.subr.bf16.mxu0 %v207_v46 }
  0x1d   :  { %210 = vmatpush3.bf16.msra.mxu0 %v209_v51 }
  0x1e   :  { %212 = vmatprep.subr.bf16.mxu0 %v211_v52 }
  0x21   :  { %214 = vmatpush3.bf16.msra.mxu0 %v213_v56 }
  0x24   :  { %127 = vmatmul.mubr.f32.vlgmr.msra.gmra.mrb[0].mxu0 %v55_v57 }
  0xf7   :  { %v180_v58 = vpop.f32.mrb[0].mxu0 }
  0xf8   :  { %v181_v59 = vpop.f32.mrb[1].mxu0 }
  0xf9   :  { %v182_v60 = vadd.f32 %v181_v59, %v180_v58 }
  0xfb   :  { %133 = vst.msk [vmem:[#allocation2] sm:$0x1] %vm132_vm0, %v182_v60 }
  0xfc   :  { %227 = shalt.err (!%p224_p4)
}
  0xfd   :  { %s228_s1 = scalar_lea.hbm %s378_s3, 16 }
  0xfe   :  { %p229_p5 = scmp.ne.s32.totalorder %s378_s3, %s228_s1  ;;  %p232_p6 = scmp.lt.u32.totalorder %s228_s1, %s378_s3 }
 0x100   :  { %p234_p7 = pnand %p232_p6, %p229_p5 }
 0x102   :  { %237 = shalt.err (!%p234_p7)
}
 0x103   :  { %143 = dma.vmem_to_hbm [thread:$0]  %s141_s25, 16, %s378_s3, [#allocation3]  }
 0x104   :  { %238 = dma.done.wait [#allocation3], 16  }
 0x105   :  { %239 = vsyncadd [#allocation3], 4294967280 }
 0x106   :  { %147 = vsyncpa [#allocation3], 1 }

</bundles_post_ra>
